<compile_context>
chip_gen: v5e
topology: v5e:2x2
jax: 0.10.0
libtpu: 0.0.40
codegen_flags: <defaults>
</compile_context>

<pallas_src>
import functools

import jax
import jax.numpy as jnp
from jax.experimental import pallas as pl
from jax.experimental.pallas import tpu as pltpu

LN_EPS = 1e-5     # torch.nn.LayerNorm default
LANE = 128        # TPU vreg lane width


def _round_up(n, m):
    return ((n + m - 1) // m) * m


def _fused_layer(h, w_ref, b_ref, n_valid):
    """Linear -> ReLU -> LayerNorm (affine folded into the NEXT layer).

    Lanes >= n_valid are padding: the weight columns and bias there are zero,
    so z is exactly 0 on padded lanes and both reductions only "see" the valid
    lanes (explicit divisor n_valid, no lane mask needed).  Variance uses
    E[z^2] - mean^2 so the two reductions are independent.  The returned
    `normed` has (-mean/std) garbage in padded lanes, but the next layer's
    weight rows for those lanes are zero, so it cannot leak into real outputs.
    Works on Pallas Refs and on plain jnp arrays (reference implementation).
    """
    w = w_ref[...]
    z = jnp.dot(h.astype(w.dtype), w, preferred_element_type=jnp.float32)
    z = jnp.maximum(z + b_ref[...].astype(jnp.float32), 0.0)       # bias + ReLU
    inv_n = 1.0 / n_valid
    mean = jnp.sum(z, axis=-1, keepdims=True) * inv_n
    msq = jnp.sum(z * z, axis=-1, keepdims=True) * inv_n
    var = msq - mean * mean   # f32, post-ReLU values: cancellation is benign here
    return (z - mean) * jax.lax.rsqrt(var + LN_EPS)


def dqn_kernel(x_ref,
               w1_ref, b1_ref,
               w2_ref, b2_ref,
               w3_ref, b3_ref,
               w4_ref, b4_ref,
               out_ref, *, hidden_valid):
    h = x_ref[...]
    h = _fused_layer(h, w1_ref, b1_ref, hidden_valid[0])
    h = _fused_layer(h, w2_ref, b2_ref, hidden_valid[1])
    h = _fused_layer(h, w3_ref, b3_ref, hidden_valid[2])
    # Final Linear (hidden3 -> padded action lanes), no activation.
    q = jnp.dot(h.astype(w4_ref.dtype), w4_ref[...],
                preferred_element_type=jnp.float32)
    out_ref[...] = (q + b4_ref[...].astype(jnp.float32)).astype(out_ref.dtype)


def prepare_params(params, compute_dtype=jnp.bfloat16):
    """Fold LN gamma/beta into the following Linear (f32, before bf16 cast),
    pad narrow feature dims to 128 lanes, and cast matmul weights."""
    w1, w2, w3, w4 = (params[k] for k in ("w1", "w2", "w3", "w4"))
    b1, b2, b3, b4 = (params[k] for k in ("b1", "b2", "b3", "b4"))
    g1, g2, g3 = (params[k] for k in ("g1", "g2", "g3"))
    be1, be2, be3 = (params[k] for k in ("be1", "be2", "be3"))

    #   (normed*g + be) @ W + b  ==  normed @ (diag(g) @ W) + (be @ W + b)
    w2f = g1.reshape(-1, 1) * w2
    b2f = be1 @ w2 + b2
    w3f = g2.reshape(-1, 1) * w3
    b3f = be2 @ w3 + b3
    w4f = g3.reshape(-1, 1) * w4
    b4f = be3 @ w4 + b4

    s = w1.shape[0]
    h1, h2, h3 = w1.shape[1], w2.shape[1], w3.shape[1]
    a = w4.shape[1]
    h1p, h2p, h3p, ap = (_round_up(d, LANE) for d in (h1, h2, h3, a))

    def pad2(arr, rows, cols):
        return jnp.pad(arr, ((0, rows - arr.shape[0]), (0, cols - arr.shape[1])))

    prep = {
        "w1": pad2(w1, s, h1p).astype(compute_dtype),
        "b1": pad2(b1, 1, h1p).astype(jnp.float32),
        "w2": pad2(w2f, h1p, h2p).astype(compute_dtype),
        "b2": pad2(b2f, 1, h2p).astype(jnp.float32),
        "w3": pad2(w3f, h2p, h3p).astype(compute_dtype),
        "b3": pad2(b3f, 1, h3p).astype(jnp.float32),
        "w4": pad2(w4f, h3p, ap).astype(compute_dtype),
        "b4": pad2(b4f, 1, ap).astype(jnp.float32),
    }
    meta = {
        "state_size": s,
        "hidden": (h1, h2, h3),       # true (unpadded) widths for LayerNorm
        "action_size": a,
        "padded": (h1p, h2p, h3p, ap),
    }
    return prep, meta


def dqn_forward(x, prep, meta, *, batch_tile=128, out_dtype=jnp.bfloat16):
    """Fused DQN forward.  Grids the batch; all params stay VMEM-resident."""
    batch = x.shape[0]
    s = meta["state_size"]
    h1p, h2p, h3p, ap = meta["padded"]

    # Tile the batch: aim for >= 2 grid steps (dual-TC on v7x), tile sized from
    # the actual batch (<= batch_tile) so padding waste is < 8 rows per tile.
    n_tiles = max(pl.cdiv(batch, batch_tile), 2)
    tb = max(8, min(batch_tile, _round_up(pl.cdiv(batch, n_tiles), 8)))
    padded_batch = _round_up(batch, tb)
    if padded_batch != batch:
        x = jnp.pad(x, ((0, padded_batch - batch), (0, 0)))
    grid = (padded_batch // tb,)

    kernel = functools.partial(dqn_kernel, hidden_valid=meta["hidden"])

    flops = 2 * padded_batch * (s * h1p + h1p * h2p + h2p * h3p + h3p * ap)
    param_bytes = sum(int(v.size) * v.dtype.itemsize for v in prep.values())
    bytes_accessed = (int(x.size) * x.dtype.itemsize + param_bytes
                      + padded_batch * ap * jnp.dtype(out_dtype).itemsize)

    out = pl.pallas_call(
        kernel,
        out_shape=jax.ShapeDtypeStruct((padded_batch, ap), out_dtype),
        grid=grid,
        in_specs=[
            pl.BlockSpec((tb, s), lambda i: (i, 0)),        # x tile (pipelined)
            pl.BlockSpec((s, h1p), lambda i: (0, 0)),       # weights/biases:
            pl.BlockSpec((1, h1p), lambda i: (0, 0)),       #   constant index_map
            pl.BlockSpec((h1p, h2p), lambda i: (0, 0)),     #   -> VMEM-resident
            pl.BlockSpec((1, h2p), lambda i: (0, 0)),
            pl.BlockSpec((h2p, h3p), lambda i: (0, 0)),
            pl.BlockSpec((1, h3p), lambda i: (0, 0)),
            pl.BlockSpec((h3p, ap), lambda i: (0, 0)),
            pl.BlockSpec((1, ap), lambda i: (0, 0)),
        ],
        out_specs=pl.BlockSpec((tb, ap), lambda i: (i, 0)),
        compiler_params=pltpu.CompilerParams(
            dimension_semantics=("parallel",),              # dual-TC on v7x
            vmem_limit_bytes=8 * 1024 * 1024,               # honest headroom
        ),
        cost_estimate=pl.CostEstimate(
            flops=flops,
            transcendentals=3 * padded_batch,               # 1 rsqrt / row / LN
            bytes_accessed=bytes_accessed,
        ),
    )(x, prep["w1"], prep["b1"], prep["w2"], prep["b2"],
      prep["w3"], prep["b3"], prep["w4"], prep["b4"])

    # Slice back to real rows / actions and upcast once.
    return out[:batch, :meta["action_size"]].astype(jnp.float32)


def _xavier_uniform(key, fan_in, fan_out):
    bound = (6.0 / (fan_in + fan_out)) ** 0.5
    return jax.random.uniform(key, (fan_in, fan_out), jnp.float32,
                              minval=-bound, maxval=bound)


def init_dqn_params(key, state_size, action_size=3, hidden_sizes=(256, 128, 64)):
    """Matches the PyTorch module's _init_weights: xavier_uniform_ weights,
    zero biases; LayerNorm gamma=1, beta=0.  Weights stored (in, out)."""
    sizes = [state_size, *hidden_sizes]
    keys = jax.random.split(key, len(hidden_sizes) + 1)
    params = {}
    for i, (fin, fout) in enumerate(zip(sizes[:-1], sizes[1:]), start=1):
        params[f"w{i}"] = _xavier_uniform(keys[i - 1], fin, fout)
        params[f"b{i}"] = jnp.zeros((1, fout), jnp.float32)
        params[f"g{i}"] = jnp.ones((1, fout), jnp.float32)    # LayerNorm weight
        params[f"be{i}"] = jnp.zeros((1, fout), jnp.float32)  # LayerNorm bias
    params["w4"] = _xavier_uniform(keys[-1], sizes[-1], action_size)
    params["b4"] = jnp.zeros((1, action_size), jnp.float32)
    return params


def dqn_reference(x, prep, meta):
    """Pure-JAX reference using the same prepared (folded/padded/bf16) params
    and the same numerics (f32 accumulation, E[z^2]-mean^2 LayerNorm)."""
    h1v, h2v, h3v = meta["hidden"]
    h = x.astype(jnp.float32)
    h = _fused_layer(h, prep["w1"], prep["b1"], h1v)
    h = _fused_layer(h, prep["w2"], prep["b2"], h2v)
    h = _fused_layer(h, prep["w3"], prep["b3"], h3v)
    q = jnp.dot(h.astype(prep["w4"].dtype), prep["w4"],
                preferred_element_type=jnp.float32)
    q = q + prep["b4"].astype(jnp.float32)
    return q[:, :meta["action_size"]]


if __name__ == "__main__":
    key = jax.random.PRNGKey(0)
    k_param, k_x = jax.random.split(key)

    batch = 50            # exercises batch padding and a 2-step grid
    state_size = 32
    action_size = 3

    params = init_dqn_params(k_param, state_size, action_size)
    prep, meta = prepare_params(params, compute_dtype=jnp.bfloat16)
    x = jax.random.normal(k_x, (batch, state_size), jnp.float32)

    # Keep weights device-resident and reuse the jitted callable (meta is
    # closed over so shapes/tiling stay static).
    fwd = jax.jit(lambda xx, pp: dqn_forward(xx, pp, meta))

    out = jax.block_until_ready(fwd(x, prep))
    ref = jax.block_until_ready(dqn_reference(x, prep, meta))

    assert out.shape == (batch, action_size)
    assert bool(jnp.all(jnp.isfinite(out)))
    # bf16 output writeback -> ~4e-3 relative rounding; compare accordingly.
    assert jnp.allclose(out, ref, atol=2e-2, rtol=2e-2), "mismatch vs reference"

    print("KERNEL_OK")
</pallas_src>

<mosaic_0001>
module attributes {stable_mosaic.version = 11 : i64} {
  func.func @dqn_kernel(%arg0: i32, %arg1: memref<32x32xf32, #tpu.memory_space<vmem>>, %arg2: memref<32x256xbf16, #tpu.memory_space<vmem>>, %arg3: memref<1x256xf32, #tpu.memory_space<vmem>>, %arg4: memref<256x128xbf16, #tpu.memory_space<vmem>>, %arg5: memref<1x128xf32, #tpu.memory_space<vmem>>, %arg6: memref<128x128xbf16, #tpu.memory_space<vmem>>, %arg7: memref<1x128xf32, #tpu.memory_space<vmem>>, %arg8: memref<128x128xbf16, #tpu.memory_space<vmem>>, %arg9: memref<1x128xf32, #tpu.memory_space<vmem>>, %arg10: memref<32x128xbf16, #tpu.memory_space<vmem>>) attributes {dimension_semantics = [#tpu.dimension_semantics<parallel>], iteration_bounds = array<i64: 2>, scalar_prefetch = 0 : i64, scratch_operands = 0 : i64, tpu.core_type = #tpu.core_type<tc>, window_params = [{transform_indices = @transform_0, window_bounds = array<i64: 32, 32>}, {pipeline_mode = #tpu.pipeline_mode<synchronous>, transform_indices = @transform_1, window_bounds = array<i64: 32, 256>}, {pipeline_mode = #tpu.pipeline_mode<synchronous>, transform_indices = @transform_2, window_bounds = array<i64: 1, 256>}, {pipeline_mode = #tpu.pipeline_mode<synchronous>, transform_indices = @transform_3, window_bounds = array<i64: 256, 128>}, {pipeline_mode = #tpu.pipeline_mode<synchronous>, transform_indices = @transform_4, window_bounds = array<i64: 1, 128>}, {pipeline_mode = #tpu.pipeline_mode<synchronous>, transform_indices = @transform_5, window_bounds = array<i64: 128, 128>}, {pipeline_mode = #tpu.pipeline_mode<synchronous>, transform_indices = @transform_6, window_bounds = array<i64: 1, 128>}, {pipeline_mode = #tpu.pipeline_mode<synchronous>, transform_indices = @transform_7, window_bounds = array<i64: 128, 128>}, {pipeline_mode = #tpu.pipeline_mode<synchronous>, transform_indices = @transform_8, window_bounds = array<i64: 1, 128>}, {transform_indices = @transform_9, window_bounds = array<i64: 32, 128>}]} {
    %c0 = arith.constant 0 : index
    %c0_0 = arith.constant 0 : index
    %0 = vector.load %arg1[%c0, %c0_0] : memref<32x32xf32, #tpu.memory_space<vmem>>, vector<32x32xf32>
    %c0_1 = arith.constant 0 : index
    %c0_2 = arith.constant 0 : index
    %1 = vector.load %arg2[%c0_1, %c0_2] : memref<32x256xbf16, #tpu.memory_space<vmem>>, vector<32x256xbf16>
    %2 = arith.truncf %0 : vector<32x32xf32> to vector<32x32xbf16>
    %cst = arith.constant dense<0.000000e+00> : vector<32x256xf32>
    %3 = tpu.matmul %2, %1, %cst {dimension_numbers = #tpu.dot_dimension_numbers<[1], [0], [0], [1], [0, 0, 1, 1], [], []>} : vector<32x32xbf16>, vector<32x256xbf16>, vector<32x256xf32> -> vector<32x256xf32>
    %c0_3 = arith.constant 0 : index
    %c0_4 = arith.constant 0 : index
    %4 = vector.load %arg3[%c0_3, %c0_4] : memref<1x256xf32, #tpu.memory_space<vmem>>, vector<1x256xf32>
    %5 = vector.broadcast %4 : vector<1x256xf32> to vector<32x256xf32>
    %6 = arith.addf %3, %5 : vector<32x256xf32>
    %cst_5 = arith.constant 0.000000e+00 : f32
    %7 = vector.broadcast %cst_5 : f32 to vector<32x256xf32>
    %8 = arith.maximumf %6, %7 : vector<32x256xf32>
    %cst_6 = arith.constant dense<0.000000e+00> : vector<32xf32>
    %9 = vector.multi_reduction <add>, %8, %cst_6 [1] : vector<32x256xf32> to vector<32xf32>
    %10 = vector.shape_cast %9 : vector<32xf32> to vector<32x1xf32>
    %cst_7 = arith.constant 3.906250e-03 : f32
    %11 = vector.broadcast %cst_7 : f32 to vector<32x1xf32>
    %12 = arith.mulf %10, %11 : vector<32x1xf32>
    %13 = arith.mulf %8, %8 : vector<32x256xf32>
    %cst_8 = arith.constant dense<0.000000e+00> : vector<32xf32>
    %14 = vector.multi_reduction <add>, %13, %cst_8 [1] : vector<32x256xf32> to vector<32xf32>
    %15 = vector.shape_cast %14 : vector<32xf32> to vector<32x1xf32>
    %cst_9 = arith.constant 3.906250e-03 : f32
    %16 = vector.broadcast %cst_9 : f32 to vector<32x1xf32>
    %17 = arith.mulf %15, %16 : vector<32x1xf32>
    %18 = arith.mulf %12, %12 : vector<32x1xf32>
    %19 = arith.subf %17, %18 : vector<32x1xf32>
    %20 = vector.broadcast %12 : vector<32x1xf32> to vector<32x256xf32>
    %21 = arith.subf %8, %20 : vector<32x256xf32>
    %cst_10 = arith.constant 9.99999974E-6 : f32
    %22 = vector.broadcast %cst_10 : f32 to vector<32x1xf32>
    %23 = arith.addf %19, %22 : vector<32x1xf32>
    %24 = math.rsqrt %23 : vector<32x1xf32>
    %25 = vector.broadcast %24 : vector<32x1xf32> to vector<32x256xf32>
    %26 = arith.mulf %21, %25 : vector<32x256xf32>
    %c0_11 = arith.constant 0 : index
    %c0_12 = arith.constant 0 : index
    %27 = vector.load %arg4[%c0_11, %c0_12] : memref<256x128xbf16, #tpu.memory_space<vmem>>, vector<256x128xbf16>
    %28 = arith.truncf %26 : vector<32x256xf32> to vector<32x256xbf16>
    %cst_13 = arith.constant dense<0.000000e+00> : vector<32x128xf32>
    %29 = tpu.matmul %28, %27, %cst_13 {dimension_numbers = #tpu.dot_dimension_numbers<[1], [0], [0], [1], [0, 0, 1, 1], [], []>} : vector<32x256xbf16>, vector<256x128xbf16>, vector<32x128xf32> -> vector<32x128xf32>
    %c0_14 = arith.constant 0 : index
    %c0_15 = arith.constant 0 : index
    %30 = vector.load %arg5[%c0_14, %c0_15] : memref<1x128xf32, #tpu.memory_space<vmem>>, vector<1x128xf32>
    %31 = vector.broadcast %30 : vector<1x128xf32> to vector<32x128xf32>
    %32 = arith.addf %29, %31 : vector<32x128xf32>
    %cst_16 = arith.constant 0.000000e+00 : f32
    %33 = vector.broadcast %cst_16 : f32 to vector<32x128xf32>
    %34 = arith.maximumf %32, %33 : vector<32x128xf32>
    %cst_17 = arith.constant dense<0.000000e+00> : vector<32xf32>
    %35 = vector.multi_reduction <add>, %34, %cst_17 [1] : vector<32x128xf32> to vector<32xf32>
    %36 = vector.shape_cast %35 : vector<32xf32> to vector<32x1xf32>
    %cst_18 = arith.constant 7.812500e-03 : f32
    %37 = vector.broadcast %cst_18 : f32 to vector<32x1xf32>
    %38 = arith.mulf %36, %37 : vector<32x1xf32>
    %39 = arith.mulf %34, %34 : vector<32x128xf32>
    %cst_19 = arith.constant dense<0.000000e+00> : vector<32xf32>
    %40 = vector.multi_reduction <add>, %39, %cst_19 [1] : vector<32x128xf32> to vector<32xf32>
    %41 = vector.shape_cast %40 : vector<32xf32> to vector<32x1xf32>
    %cst_20 = arith.constant 7.812500e-03 : f32
    %42 = vector.broadcast %cst_20 : f32 to vector<32x1xf32>
    %43 = arith.mulf %41, %42 : vector<32x1xf32>
    %44 = arith.mulf %38, %38 : vector<32x1xf32>
    %45 = arith.subf %43, %44 : vector<32x1xf32>
    %46 = vector.broadcast %38 : vector<32x1xf32> to vector<32x128xf32>
    %47 = arith.subf %34, %46 : vector<32x128xf32>
    %cst_21 = arith.constant 9.99999974E-6 : f32
    %48 = vector.broadcast %cst_21 : f32 to vector<32x1xf32>
    %49 = arith.addf %45, %48 : vector<32x1xf32>
    %50 = math.rsqrt %49 : vector<32x1xf32>
    %51 = vector.broadcast %50 : vector<32x1xf32> to vector<32x128xf32>
    %52 = arith.mulf %47, %51 : vector<32x128xf32>
    %c0_22 = arith.constant 0 : index
    %c0_23 = arith.constant 0 : index
    %53 = vector.load %arg6[%c0_22, %c0_23] : memref<128x128xbf16, #tpu.memory_space<vmem>>, vector<128x128xbf16>
    %54 = arith.truncf %52 : vector<32x128xf32> to vector<32x128xbf16>
    %cst_24 = arith.constant dense<0.000000e+00> : vector<32x128xf32>
    %55 = tpu.matmul %54, %53, %cst_24 {dimension_numbers = #tpu.dot_dimension_numbers<[1], [0], [0], [1], [0, 0, 1, 1], [], []>} : vector<32x128xbf16>, vector<128x128xbf16>, vector<32x128xf32> -> vector<32x128xf32>
    %c0_25 = arith.constant 0 : index
    %c0_26 = arith.constant 0 : index
    %56 = vector.load %arg7[%c0_25, %c0_26] : memref<1x128xf32, #tpu.memory_space<vmem>>, vector<1x128xf32>
    %57 = vector.broadcast %56 : vector<1x128xf32> to vector<32x128xf32>
    %58 = arith.addf %55, %57 : vector<32x128xf32>
    %cst_27 = arith.constant 0.000000e+00 : f32
    %59 = vector.broadcast %cst_27 : f32 to vector<32x128xf32>
    %60 = arith.maximumf %58, %59 : vector<32x128xf32>
    %cst_28 = arith.constant dense<0.000000e+00> : vector<32xf32>
    %61 = vector.multi_reduction <add>, %60, %cst_28 [1] : vector<32x128xf32> to vector<32xf32>
    %62 = vector.shape_cast %61 : vector<32xf32> to vector<32x1xf32>
    %cst_29 = arith.constant 1.562500e-02 : f32
    %63 = vector.broadcast %cst_29 : f32 to vector<32x1xf32>
    %64 = arith.mulf %62, %63 : vector<32x1xf32>
    %65 = arith.mulf %60, %60 : vector<32x128xf32>
    %cst_30 = arith.constant dense<0.000000e+00> : vector<32xf32>
    %66 = vector.multi_reduction <add>, %65, %cst_30 [1] : vector<32x128xf32> to vector<32xf32>
    %67 = vector.shape_cast %66 : vector<32xf32> to vector<32x1xf32>
    %cst_31 = arith.constant 1.562500e-02 : f32
    %68 = vector.broadcast %cst_31 : f32 to vector<32x1xf32>
    %69 = arith.mulf %67, %68 : vector<32x1xf32>
    %70 = arith.mulf %64, %64 : vector<32x1xf32>
    %71 = arith.subf %69, %70 : vector<32x1xf32>
    %72 = vector.broadcast %64 : vector<32x1xf32> to vector<32x128xf32>
    %73 = arith.subf %60, %72 : vector<32x128xf32>
    %cst_32 = arith.constant 9.99999974E-6 : f32
    %74 = vector.broadcast %cst_32 : f32 to vector<32x1xf32>
    %75 = arith.addf %71, %74 : vector<32x1xf32>
    %76 = math.rsqrt %75 : vector<32x1xf32>
    %77 = vector.broadcast %76 : vector<32x1xf32> to vector<32x128xf32>
    %78 = arith.mulf %73, %77 : vector<32x128xf32>
    %79 = arith.truncf %78 : vector<32x128xf32> to vector<32x128xbf16>
    %c0_33 = arith.constant 0 : index
    %c0_34 = arith.constant 0 : index
    %80 = vector.load %arg8[%c0_33, %c0_34] : memref<128x128xbf16, #tpu.memory_space<vmem>>, vector<128x128xbf16>
    %cst_35 = arith.constant dense<0.000000e+00> : vector<32x128xf32>
    %81 = tpu.matmul %79, %80, %cst_35 {dimension_numbers = #tpu.dot_dimension_numbers<[1], [0], [0], [1], [0, 0, 1, 1], [], []>} : vector<32x128xbf16>, vector<128x128xbf16>, vector<32x128xf32> -> vector<32x128xf32>
    %c0_36 = arith.constant 0 : index
    %c0_37 = arith.constant 0 : index
    %82 = vector.load %arg9[%c0_36, %c0_37] : memref<1x128xf32, #tpu.memory_space<vmem>>, vector<1x128xf32>
    %83 = vector.broadcast %82 : vector<1x128xf32> to vector<32x128xf32>
    %84 = arith.addf %81, %83 : vector<32x128xf32>
    %85 = arith.truncf %84 : vector<32x128xf32> to vector<32x128xbf16>
    %c0_38 = arith.constant 0 : index
    %c0_39 = arith.constant 0 : index
    %86 = vector.load %arg10[%c0_38, %c0_39] : memref<32x128xbf16, #tpu.memory_space<vmem>>, vector<32x128xbf16>
    tpu.vector_store %arg10[%c0_38, %c0_39], %85 {strides = array<i32>} : memref<32x128xbf16, #tpu.memory_space<vmem>>, vector<32x128xbf16>,
    return
  }
  func.func @transform_0(%arg0: i32) -> (i32, i32) {
    %c0_i32 = arith.constant 0 : i32
    %c0_i32_0 = arith.constant 0 : i32
    return %arg0, %c0_i32 : i32, i32
  }
  func.func @transform_1(%arg0: i32) -> (i32, i32) {
    %c0_i32 = arith.constant 0 : i32
    %c0_i32_0 = arith.constant 0 : i32
    %c0_i32_1 = arith.constant 0 : i32
    return %c0_i32, %c0_i32_0 : i32, i32
  }
  func.func @transform_2(%arg0: i32) -> (i32, i32) {
    %c0_i32 = arith.constant 0 : i32
    %c0_i32_0 = arith.constant 0 : i32
    %c0_i32_1 = arith.constant 0 : i32
    return %c0_i32, %c0_i32_0 : i32, i32
  }
  func.func @transform_3(%arg0: i32) -> (i32, i32) {
    %c0_i32 = arith.constant 0 : i32
    %c0_i32_0 = arith.constant 0 : i32
    %c0_i32_1 = arith.constant 0 : i32
    return %c0_i32, %c0_i32_0 : i32, i32
  }
  func.func @transform_4(%arg0: i32) -> (i32, i32) {
    %c0_i32 = arith.constant 0 : i32
    %c0_i32_0 = arith.constant 0 : i32
    %c0_i32_1 = arith.constant 0 : i32
    return %c0_i32, %c0_i32_0 : i32, i32
  }
  func.func @transform_5(%arg0: i32) -> (i32, i32) {
    %c0_i32 = arith.constant 0 : i32
    %c0_i32_0 = arith.constant 0 : i32
    %c0_i32_1 = arith.constant 0 : i32
    return %c0_i32, %c0_i32_0 : i32, i32
  }
  func.func @transform_6(%arg0: i32) -> (i32, i32) {
    %c0_i32 = arith.constant 0 : i32
    %c0_i32_0 = arith.constant 0 : i32
    %c0_i32_1 = arith.constant 0 : i32
    return %c0_i32, %c0_i32_0 : i32, i32
  }
  func.func @transform_7(%arg0: i32) -> (i32, i32) {
    %c0_i32 = arith.constant 0 : i32
    %c0_i32_0 = arith.constant 0 : i32
    %c0_i32_1 = arith.constant 0 : i32
    return %c0_i32, %c0_i32_0 : i32, i32
  }
  func.func @transform_8(%arg0: i32) -> (i32, i32) {
    %c0_i32 = arith.constant 0 : i32
    %c0_i32_0 = arith.constant 0 : i32
    %c0_i32_1 = arith.constant 0 : i32
    return %c0_i32, %c0_i32_0 : i32, i32
  }
  func.func @transform_9(%arg0: i32) -> (i32, i32) {
    %c0_i32 = arith.constant 0 : i32
    %c0_i32_0 = arith.constant 0 : i32
    return %arg0, %c0_i32 : i32, i32
  }
}

</mosaic_0001>

<bundles_post_ra>
// kernel: _lambda_.1
= control target key start
LH: loop header
LB: loop body
LE: loop exit
PB: predicated region body
PF: predicated region fallthrough
CT: control target
= control target key end

     0   :  { %14 = vsyncpa [#allocation3], 0  ;;  %s1833_s0 = inlined_call_operand.vmem [shape: f32[64,32], index: 0, kind: input, shape index: {}]   ;;  %s1834_s1 = inlined_call_operand.hbm [shape: bf16[32,256], index: 1, kind: input, shape index: {}]   ;;  %s1835_s2 = inlined_call_operand.vmem [shape: f32[1,256], index: 2, kind: input, shape index: {}]   ;;  %s1836_s3 = inlined_call_operand.vmem [shape: bf16[256,128], index: 3, kind: input, shape index: {}]   ;;  %s1837_s4 = inlined_call_operand.vmem [shape: f32[1,128], index: 4, kind: input, shape index: {}]   ;;  %s1838_s5 = inlined_call_operand.vmem [shape: bf16[128,128], index: 5, kind: input, shape index: {}]   ;;  %s1839_s6 = inlined_call_operand.vmem [shape: f32[1,128], index: 6, kind: input, shape index: {}]   ;;  %s1840_s7 = inlined_call_operand.hbm [shape: bf16[128,128], index: 7, kind: input, shape index: {}]   ;;  %s1841_s8 = inlined_call_operand.vmem [shape: f32[1,128], index: 8, kind: input, shape index: {}]   ;;  %s1842_s9 = inlined_call_operand.vmem [shape: bf16[64,128], index: 9, kind: output, shape index: {}]  }
   0x1   :  { %15 = vsyncpa [#allocation5], 0  ;;  %s1592_s30 = smov 0  }
   0x2 LB: > { %s257_s12 = sshll.u32 %s1834_s1, 4  ;;  %s1190_s13 = sadd.s32 4294967295, %s1534_s30   ;;  %s1534_s30 = sphi %s1592_s30, %s21_s30   ;;  %s258_s12 = int_to_ptr.hbm [resolvable:$true] %s257_s12 }
   0x3   : > { %p1192_p0 = scmp.ge.s32.totalorder %s1534_s30, 1  ;;  %p246_p1 = scmp.lt.s32.totalorder %s1534_s30, 3 }
   0x4   : > { %p1603_p2 = scmp.eq.s32.totalorder %s1190_s13, 0  ;;  %s1536_s16 = smov [#allocation2]  }
   0x5   : > { %p1607_p3 = pnand %p1192_p0, %p246_p1  ;;  %s259_s17 = sshll.u32 %s1536_s16, 4  ;;  %s260_s17 = int_to_ptr.vmem [resolvable:$true] %s259_s17 }
   0x6   : > { %s286_s20 = sshll.u32 %s1840_s7, 4  ;;  %s1537_s21 = smov [#allocation4]   ;;  %s287_s20 = int_to_ptr.hbm [resolvable:$true] %s286_s20 }
   0x7   : > { %p1408_p4 = pneg %p1607_p3  ;;  %s288_s22 = sshll.u32 %s1537_s21, 4  ;;  %s289_s22 = int_to_ptr.vmem [resolvable:$true] %s288_s22 }
   0x8   : > { %s1538_s23 = smov 128   ;;  %s1539_s24 = smov 8  }
   0x9   : > { %p1409_p5 = pnand %p1603_p2, %p1408_p4  ;;  %s1540_s25 = smov 64  }
   0xa   : > { %s1541_s26 = smov 4   ;;  %316 = sbr.rel (%p1607_p3) target bundleno = 1047 (0x417), region = 56 }
   0xb   : > { %1411 = dma.hbm_to_vmem [thread:$0]  (!%p1409_p5), %s258_s12, 512, %s260_s17, [#allocation3], %s1538_s23, %s1538_s23, %s1539_s24  }
   0xc   : > { %1414 = dma.hbm_to_vmem [thread:$0]  (!%p1409_p5), %s287_s20, 1024, %s289_s22, [#allocation5], %s1540_s25, %s1540_s25, %s1541_s26  }
   0xf   : > { %1525 = dma.done.wait (%p1603_p2), [#allocation3], 512  }
  0x10   : > { %1527 = vsyncadd (%p1603_p2), [#allocation3], 4294966784 }
  0x11   : > { %1529 = dma.done.wait (%p1603_p2), [#allocation5], 1024  }
  0x12   : > { %1531 = vsyncadd (%p1603_p2), [#allocation5], 4294966272  ;;  %s1199_s27 = sshll.u32 %s1190_s13, 2  ;;  %v1213_v0 = vld [vmem:[#allocation2 + $0x10] sm:$0xf]  ;;  %vm407_vm0 = vcmask 261120  }
  0x13   : > { %p359_p6 = scmp.lt.s32.totalorder %s1199_s27, 7  ;;  %v1356_v1 = vld [vmem:[#allocation2 + $0x14] sm:$0xf0]  ;;  %v1355_v2 = vld [vmem:[#allocation2 + $0x14] sm:$0xf] }
  0x14   : > { %v1214_v3 = vor.u32 %v1356_v1, %v1213_v0  ;;  %v1215_v4 = vld [vmem:[#allocation2 + $0x18] sm:$0xf0]  ;;  %v1205_v5 = vld [vmem:[#allocation2] sm:$0xf]  ;;  %v1354_v6 = vld [vmem:[#allocation2 + $0x4] sm:$0xf0] }
  0x15   : > { %s1846_s27 = smov (!%p359_p6, %s1199_s27), 7  ;;  %v1218_v7 = vor.u32 %v1355_v2, %v1215_v4  ;;  %v1353_v8 = vld [vmem:[#allocation2 + $0x4] sm:$0xf]  ;;  %v1207_v9 = vld [vmem:[#allocation2 + $0x8] sm:$0xf0]  ;;  %v1206_v10 = vor.u32 %v1354_v6, %v1205_v5  ;;  %v1364_v61 = vld [vmem:[%s1836_s3 + $0x38] sm:$0xff] }
  0x16   : > { %s1200_s28 = sshll.u32 %s1846_s27, 3  ;;  %420 = vmatpush.bf16.msra.mxu0 %v1214_v3  ;;  %v1210_v13 = vor.u32 %v1353_v8, %v1207_v9  ;;  %v381_v18 = vld [vmem:[%s1835_s2] sm:$0x3]  ;;  %v1372_v62 = vld [vmem:[%s1836_s3 + $0x78] sm:$0xff]  ;;  %704 = vmatpush.bf16.msra.mxu2 %v1364_v61  ;;  %v1363_v63 = vld [vmem:[%s1836_s3 + $0x30] sm:$0xff] }
  0x17   : > { %s362_s11 = scalar_lea.vmem %s1833_s0, %s1200_s28  ;;  %439 = vmatpush.bf16.msra.mxu1 %v1218_v7  ;;  %v383_v19 = vperm.slane %v381_v18, 0  ;;  %v384_v20 = vperm.slane %v381_v18, 1  ;;  %723 = vmatpush.bf16.msra.mxu3 %v1372_v62  ;;  %v1371_v0 = vld [vmem:[%s1836_s3 + $0x70] sm:$0xff]  ;;  %v1362_v1 = vld [vmem:[%s1836_s3 + $0x28] sm:$0xff]  ;;  %v1361_v3 = vld [vmem:[%s1836_s3 + $0x20] sm:$0xff] }
  0x18   : > { %v371_v11 = vld [vmem:[%s362_s11] sm:$0xff]  ;;  %v372_v12 = vld [vmem:[%s362_s11 + $0x8] sm:$0xff]  ;;  %v373_v15 = vld [vmem:[%s362_s11 + $0x10] sm:$0xff] }
  0x19   : > { %v379_v14 = vpack.c.bf16 %v372_v12, %v371_v11  ;;  %v374_v16 = vld [vmem:[%s362_s11 + $0x18] sm:$0xff]  ;;  %v1370_v2 = vld [vmem:[%s1836_s3 + $0x68] sm:$0xff]  ;;  %v1369_v4 = vld [vmem:[%s1836_s3 + $0x60] sm:$0xff]  ;;  %s1202_s11 = sshll.u32 %s1846_s27, 2 }
  0x1a   : > { %421 = vmatpush.bf16.msra.mxu0 %v1206_v10  ;;  %v380_v17 = vpack.c.bf16 %v374_v16, %v373_v15  ;;  %705 = vmatpush.bf16.msra.mxu2 %v1363_v63  ;;  %v1360_v5 = vld [vmem:[%s1836_s3 + $0x18] sm:$0xff]  ;;  %v1359_v7 = vld [vmem:[%s1836_s3 + $0x10] sm:$0xff]  ;;  %v1358_v9 = vld [vmem:[%s1836_s3 + $0x8] sm:$0xff]  ;;  %s368_s14 = scalar_lea.vmem %s1842_s9, %s1202_s11 }
  0x1b   : > { %440 = vmatpush.bf16.msra.mxu1 %v1210_v13  ;;  %724 = vmatpush.bf16.msra.mxu3 %v1371_v0  ;;  %v1368_v6 = vld [vmem:[%s1836_s3 + $0x58] sm:$0xff]  ;;  %v1367_v8 = vld [vmem:[%s1836_s3 + $0x50] sm:$0xff]  ;;  %v1366_v10 = vld [vmem:[%s1836_s3 + $0x48] sm:$0xff] }
  0x1c   : > { %v1365_v15 = vld [vmem:[%s1836_s3 + $0x40] sm:$0xff] }
  0x1d   : > { %1219 = vmatmul.msk.bf16.vlgmr.msra.gmra.mxu0 %vm407_vm0, %v379_v14 }
  0x1e   : > { %1221 = vmatmul.msk.bf16.vlgmr.msra.gmra.mxu1 %vm407_vm0, %v379_v14  ;;  %706 = vmatpush.bf16.msra.mxu2 %v1362_v1  ;;  %v1357_v14 = vld [vmem:[%s1836_s3] sm:$0xff] }
  0x1f   : > { %725 = vmatpush.bf16.msra.mxu3 %v1370_v2 }
  0x22   : > { %707 = vmatpush.bf16.msra.mxu2 %v1361_v3 }
  0x23   : > { %726 = vmatpush.bf16.msra.mxu3 %v1369_v4 }
  0x26   : > { %708 = vmatpush.bf16.msra.mxu2 %v1360_v5 }
  0x27   : > { %727 = vmatpush.bf16.msra.mxu3 %v1368_v6 }
  0x2a   : > { %709 = vmatpush.bf16.msra.mxu2 %v1359_v7 }
  0x2b   : > { %728 = vmatpush.bf16.msra.mxu3 %v1367_v8 }
  0x2d   : > { %1220 = vmatmul.msk.bf16.gmra.mxu0 %vm407_vm0, %v380_v17 }
  0x2e   : > { %1222 = vmatmul.msk.bf16.gmra.mxu1 %vm407_vm0, %v380_v17  ;;  %710 = vmatpush.bf16.msra.mxu2 %v1358_v9 }
  0x2f   : > { %729 = vmatpush.bf16.msra.mxu3 %v1366_v10 }
  0x32   : > { %711 = vmatpush.bf16.msra.mxu2 %v1357_v14 }
  0x33   : > { %730 = vmatpush.bf16.msra.mxu3 %v1365_v15 }
  0x9a   : > { %v423_v21 = vpop.f32.mrf.mxu0 }
  0x9b   : > { %v424_v22 = vadd.f32 %v423_v21, %v383_v19  ;;  %v442_v23 = vpop.f32.mrf.mxu1 }
  0x9c   : > { %v443_v24 = vadd.f32 %v442_v23, %v384_v20 }
  0x9d   : > { %v1637_v25 = vmax.f32 %v424_v22, 0.0 }
  0x9e   : > { %v1639_v26 = vmax.f32 %v443_v24, 0.0 }
  0x9f   : > { %v476_v27 = vmul.f32 %v1637_v25, %v1637_v25 }
  0xa0   : > { %v460_v28 = vadd.f32 %v1639_v26, %v1637_v25  ;;  %v477_v29 = vmul.f32 %v1639_v26, %v1639_v26 }
  0xa2   : > { %461 = vadd.xlane.f32.xlu0 %v460_v28  ;;  %v425_v30 = vpop.f32.mrf.mxu0  ;;  %v484_v31 = vadd.f32 %v477_v29, %v476_v27 }
  0xa3   : > { %v426_v32 = vadd.f32 %v425_v30, %v383_v19  ;;  %v444_v33 = vpop.f32.mrf.mxu1 }
  0xa4   : > { %v445_v34 = vadd.f32 %v444_v33, %v384_v20  ;;  %485 = vadd.xlane.f32.xlu1 %v484_v31 }
  0xa5   : > { %v1647_v35 = vmax.f32 %v426_v32, 0.0 }
  0xa6   : > { %v1649_v36 = vmax.f32 %v445_v34, 0.0 }
  0xa7   : > { %v478_v37 = vmul.f32 %v1647_v35, %v1647_v35 }
  0xa8   : > { %v463_v38 = vadd.f32 %v1649_v36, %v1647_v35  ;;  %v479_v39 = vmul.f32 %v1649_v36, %v1649_v36 }
  0xaa   : > { %464 = vadd.xlane.f32.xlu0 %v463_v38  ;;  %v428_v40 = vpop.f32.mrf.mxu0  ;;  %v487_v41 = vadd.f32 %v479_v39, %v478_v37 }
  0xab   : > { %v429_v42 = vadd.f32 %v428_v40, %v383_v19  ;;  %v447_v43 = vpop.f32.mrf.mxu1 }
  0xac   : > { %v448_v44 = vadd.f32 %v447_v43, %v384_v20  ;;  %488 = vadd.xlane.f32.xlu1 %v487_v41 }
  0xad   : > { %v1657_v45 = vmax.f32 %v429_v42, 0.0 }
  0xae   : > { %v1659_v46 = vmax.f32 %v448_v44, 0.0 }
  0xaf   : > { %v480_v47 = vmul.f32 %v1657_v45, %v1657_v45 }
  0xb0   : > { %v466_v48 = vadd.f32 %v1659_v46, %v1657_v45  ;;  %v481_v49 = vmul.f32 %v1659_v46, %v1659_v46 }
  0xb2   : > { %467 = vadd.xlane.f32.xlu2 %v466_v48  ;;  %v430_v50 = vpop.f32.mrf.mxu0  ;;  %v490_v51 = vadd.f32 %v481_v49, %v480_v47 }
  0xb3   : > { %v431_v52 = vadd.f32 %v430_v50, %v383_v19  ;;  %v449_v53 = vpop.f32.mrf.mxu1 }
  0xb4   : > { %v450_v54 = vadd.f32 %v449_v53, %v384_v20  ;;  %491 = vadd.xlane.f32.xlu0 %v490_v51 }
  0xb5   : > { %v1667_v55 = vmax.f32 %v431_v52, 0.0 }
  0xb6   : > { %v1669_v56 = vmax.f32 %v450_v54, 0.0 }
  0xb7   : > { %v482_v57 = vmul.f32 %v1667_v55, %v1667_v55 }
  0xb8   : > { %v469_v58 = vadd.f32 %v1669_v56, %v1667_v55  ;;  %v483_v59 = vmul.f32 %v1669_v56, %v1669_v56 }
  0xba   : > { %470 = vadd.xlane.f32.xlu2 %v469_v58  ;;  %v493_v60 = vadd.f32 %v483_v59, %v482_v57 }
  0xbc   : > { %494 = vadd.xlane.f32.xlu1 %v493_v60 }
 0x115   : > { %v462_v11 = vpop.xlane.xlu0 %461 }
 0x116   : > { %v1719_v12 = vmul.f32 0.00390625, %v462_v11 }
 0x117   : > { %v486_v13 = vpop.xlane.xlu1 %485 }
 0x118   : > { %v496_v16 = vmul.f32 0.00390625, %v486_v13  ;;  %v500_v17 = vmul.f32 %v1719_v12, %v1719_v12  ;;  %v508_v60 = vsub.f32 %v1637_v25, %v1719_v12  ;;  %v509_v1 = vsub.f32 %v1639_v26, %v1719_v12 }
 0x11a   : > { %v504_v18 = vsub.f32 %v496_v16, %v500_v17 }
 0x11c   : > { %v516_v19 = vadd.f32 1e-05, %v504_v18 }
 0x11d   : > { %v465_v20 = vpop.xlane.xlu0 %464 }
 0x11e   : > { %1436 = vrsqrt.f32 %v516_v19  ;;  %v473_v21 = vmul.f32 0.00390625, %v465_v20  ;;  %vm526_vm2 = vweird.f32 %v516_v19 }
 0x11f   : > { %v489_v22 = vpop.xlane.xlu1 %488 }
 0x120   : > { %v497_v23 = vmul.f32 0.00390625, %v489_v22  ;;  %v501_v24 = vmul.f32 %v473_v21, %v473_v21  ;;  %v510_v2 = vsub.f32 %v1647_v35, %v473_v21  ;;  %v511_v3 = vsub.f32 %v1649_v36, %v473_v21 }
 0x122   : > { %v505_v27 = vsub.f32 %v497_v23, %v501_v24 }
 0x124   : > { %v1437_v28 = vpop.eup %1436  ;;  %v517_v29 = vadd.f32 1e-05, %v505_v27 }
 0x125   : > { %v521_v30 = vmul.f32 %v1437_v28, %v516_v19  ;;  %v468_v31 = vpop.xlane.xlu2 %467  ;;  %vm527_vm1 = vweird.f32 %v1437_v28 }
 0x126   : > { %1438 = vrsqrt.f32 %v517_v29  ;;  %v1729_v32 = vmul.f32 0.00390625, %v468_v31  ;;  %vm528_vm4 = vmor %vm526_vm2, %vm527_vm1  ;;  %vm536_vm5 = vweird.f32 %v517_v29 }
 0x127   : > { %v522_v33 = vmul.f32 %v1437_v28, %v521_v30  ;;  %v492_v34 = vpop.xlane.xlu0 %491 }
 0x128   : > { %v502_v37 = vmul.f32 %v1729_v32, %v1729_v32  ;;  %v498_v38 = vmul.f32 0.00390625, %v492_v34  ;;  %v512_v18 = vsub.f32 %v1657_v45, %v1729_v32  ;;  %v513_v19 = vsub.f32 %v1659_v46, %v1729_v32  ;;  %v1433_v45 = vld [vmem:[%s1837_s4] ss:$0 sm:$0xff] }
 0x129   : > { %v523_v39 = vmul.f32 0.5, %v522_v33 }
 0x12a   : > { %v506_v40 = vsub.f32 %v498_v38, %v502_v37 }
 0x12b   : > { %v524_v43 = vsub.f32 1.5, %v523_v39 }
 0x12c   : > { %v1439_v41 = vpop.eup %1438  ;;  %v518_v42 = vadd.f32 1e-05, %v506_v40 }
 0x12d   : > { %v531_v44 = vmul.f32 %v1439_v41, %v517_v29  ;;  %v471_v47 = vpop.xlane.xlu2 %470  ;;  %v525_v54 = vmul.f32 %v1437_v28, %v524_v43  ;;  %vm537_vm3 = vweird.f32 %v1439_v41 }
 0x12e   : > { %1440 = vrsqrt.f32 %v518_v42  ;;  %v475_v48 = vmul.f32 0.00390625, %v471_v47  ;;  %vm538_vm6 = vmor %vm536_vm5, %vm537_vm3  ;;  %vm546_vm8 = vweird.f32 %v518_v42 }
 0x12f   : > { %v532_v49 = vmul.f32 %v1439_v41, %v531_v44  ;;  %v495_v50 = vpop.xlane.xlu1 %494  ;;  %v529_v63 = vsel %vm528_vm4, %v1437_v28, %v525_v54 }
 0x130   : > { %v503_v51 = vmul.f32 %v475_v48, %v475_v48  ;;  %v499_v52 = vmul.f32 0.00390625, %v495_v50  ;;  %v560_v6 = vmul.f32 %v529_v63, %v508_v60  ;;  %v561_v25 = vmul.f32 %v529_v63, %v509_v1  ;;  %v1378_v60 = vld [vmem:[%s1838_s5 + $0x28] sm:$0xff]  ;;  %v1375_v63 = vld [vmem:[%s1838_s5 + $0x10] sm:$0xff] }
 0x131   : > { %v533_v53 = vmul.f32 0.5, %v532_v49  ;;  %v514_v20 = vsub.f32 %v1667_v55, %v475_v48  ;;  %v515_v21 = vsub.f32 %v1669_v56, %v475_v48 }
 0x132   : > { %v507_v57 = vsub.f32 %v499_v52, %v503_v51 }
 0x133   : > { %v534_v58 = vsub.f32 1.5, %v533_v53 }
 0x134   : > { %v1441_v59 = vpop.eup %1440  ;;  %v519_v61 = vadd.f32 1e-05, %v507_v57 }
 0x135   : > { %v541_v62 = vmul.f32 %v1441_v59, %v518_v42  ;;  %v535_v0 = vmul.f32 %v1439_v41, %v534_v58  ;;  %vm547_vm7 = vweird.f32 %v1441_v59  ;;  %v1380_v58 = vld [vmem:[%s1838_s5 + $0x38] sm:$0xff] }
 0x136   : > { %1442 = vrsqrt.f32 %v519_v61  ;;  %vm548_vm10 = vmor %vm546_vm8, %vm547_vm7  ;;  %vm556_vm11 = vweird.f32 %v519_v61  ;;  %904 = vmatpush.bf16.msrb.mxu0 %v1380_v58 }
 0x137   : > { %v542_v4 = vmul.f32 %v1441_v59, %v541_v62  ;;  %v539_v5 = vsel %vm538_vm6, %v1439_v41, %v535_v0  ;;  %v1376_v62 = vld [vmem:[%s1838_s5 + $0x18] sm:$0xff]  ;;  %v1374_v0 = vld [vmem:[%s1838_s5 + $0x8] sm:$0xff] }
 0x138   : > { %v562_v7 = vmul.f32 %v539_v5, %v510_v2  ;;  %v563_v8 = vmul.f32 %v539_v5, %v511_v3 }
 0x139   : > { %v543_v9 = vmul.f32 0.5, %v542_v4 }
 0x13a   : > { %v600_v10 = vpack.c.bf16 %v562_v7, %v560_v6  ;;  %v601_v11 = vpack.c.bf16 %v563_v8, %v561_v25  ;;  %v1373_v6 = vld [vmem:[%s1838_s5] sm:$0xff] }
 0x13b   : > { %v544_v14 = vsub.f32 1.5, %v543_v9 }
 0x13c   : > { %v1443_v13 = vpop.eup %1442  ;;  %712 = vmatmul.bf16.vlgmr.msra.gmra.mxu2 %v600_v10  ;;  %731 = vmatmul.bf16.vlgmr.msra.gmra.mxu3 %v601_v11 }
 0x13d   : > { %v551_v26 = vmul.f32 %v1443_v13, %v519_v61  ;;  %v545_v15 = vmul.f32 %v1441_v59, %v544_v14  ;;  %vm557_vm9 = vweird.f32 %v1443_v13  ;;  %v1377_v61 = vld [vmem:[%s1838_s5 + $0x20] sm:$0xff] }
 0x13e   : > { %vm558_vm12 = vmor %vm556_vm11, %vm557_vm9 }
 0x13f   : > { %v552_v12 = vmul.f32 %v1443_v13, %v551_v26  ;;  %v549_v16 = vsel %vm548_vm10, %v1441_v59, %v545_v15  ;;  %v1379_v59 = vld [vmem:[%s1838_s5 + $0x30] sm:$0xff] }
 0x140   : > { %v564_v23 = vmul.f32 %v549_v16, %v512_v18  ;;  %v565_v27 = vmul.f32 %v549_v16, %v513_v19  ;;  %905 = vmatpush.bf16.msrb.mxu0 %v1379_v59 }
 0x141   : > { %v553_v35 = vmul.f32 0.5, %v552_v12 }
 0x143   : > { %v554_v36 = vsub.f32 1.5, %v553_v35 }
 0x144   : > { %906 = vmatpush.bf16.msrb.mxu0 %v1378_v60 }
 0x145   : > { %v555_v17 = vmul.f32 %v1443_v13, %v554_v36 }
 0x147   : > { %v559_v22 = vsel %vm558_vm12, %v1443_v13, %v555_v17 }
 0x148   : > { %v566_v24 = vmul.f32 %v559_v22, %v514_v20  ;;  %v567_v28 = vmul.f32 %v559_v22, %v515_v21  ;;  %907 = vmatpush.bf16.msrb.mxu0 %v1377_v61 }
 0x14a   : > { %v602_v29 = vpack.c.bf16 %v566_v24, %v564_v23  ;;  %v603_v30 = vpack.c.bf16 %v567_v28, %v565_v27 }
 0x14c   : > { %717 = vmatmul.bf16.gmra.mxu2 %v602_v29  ;;  %736 = vmatmul.bf16.gmra.mxu3 %v603_v30 }
 0x14d   : > { %908 = vmatpush.bf16.msrb.mxu0 %v1376_v62 }
 0x151   : > { %909 = vmatpush.bf16.msrb.mxu0 %v1375_v63 }
 0x155   : > { %910 = vmatpush.bf16.msrb.mxu0 %v1374_v0 }
 0x159   : > { %911 = vmatpush.bf16.msrb.mxu0 %v1373_v6  ;;  %v1434_v6 = vld [vmem:[%s1839_s6] ss:$0 sm:$0xff] }
 0x1bf   : > { %v713_v31 = vpop.f32.mrf.mxu2  ;;  %v732_v46 = vpop.f32.mrf.mxu3 }
 0x1c0   : > { %v714_v32 = vadd.f32 %v1433_v45, %v713_v31 }
 0x1c2   : > { %v733_v55 = vadd.f32 %v732_v46, %v714_v32 }
 0x1c4   : > { %v1748_v33 = vmax.f32 %v733_v55, 0.0 }
 0x1c6   : > { %746 = vadd.xlane.f32.xlu2 %v1748_v33  ;;  %v758_v56 = vmul.f32 %v1748_v33, %v1748_v33 }
 0x1c7   : > { %v715_v34 = vpop.f32.mrf.mxu2  ;;  %v734_v37 = vpop.f32.mrf.mxu3 }
 0x1c8   : > { %v716_v38 = vadd.f32 %v1433_v45, %v715_v34  ;;  %762 = vadd.xlane.f32.xlu1 %v758_v56 }
 0x1ca   : > { %v735_v39 = vadd.f32 %v734_v37, %v716_v38 }
 0x1cc   : > { %v1753_v40 = vmax.f32 %v735_v39, 0.0 }
 0x1ce   : > { %748 = vadd.xlane.f32.xlu0 %v1753_v40  ;;  %v759_v41 = vmul.f32 %v1753_v40, %v1753_v40 }
 0x1cf   : > { %v718_v42 = vpop.f32.mrf.mxu2  ;;  %v737_v43 = vpop.f32.mrf.mxu3 }
 0x1d0   : > { %v719_v44 = vadd.f32 %v1433_v45, %v718_v42  ;;  %764 = vadd.xlane.f32.xlu2 %v759_v41 }
 0x1d2   : > { %v738_v47 = vadd.f32 %v737_v43, %v719_v44 }
 0x1d4   : > { %v1758_v48 = vmax.f32 %v738_v47, 0.0 }
 0x1d6   : > { %750 = vadd.xlane.f32.xlu0 %v1758_v48  ;;  %v760_v49 = vmul.f32 %v1758_v48, %v1758_v48 }
 0x1d7   : > { %v720_v50 = vpop.f32.mrf.mxu2  ;;  %v739_v52 = vpop.f32.mrf.mxu3 }
 0x1d8   : > { %v721_v51 = vadd.f32 %v1433_v45, %v720_v50  ;;  %766 = vadd.xlane.f32.xlu2 %v760_v49 }
 0x1da   : > { %v740_v53 = vadd.f32 %v739_v52, %v721_v51 }
 0x1dc   : > { %v1763_v54 = vmax.f32 %v740_v53, 0.0 }
 0x1de   : > { %752 = vadd.xlane.f32.xlu1 %v1763_v54  ;;  %v761_v57 = vmul.f32 %v1763_v54, %v1763_v54 }
 0x1e0   : > { %768 = vadd.xlane.f32.xlu0 %v761_v57 }
 0x239   : > { %v747_v1 = vpop.xlane.xlu2 %746 }
 0x23a   : > { %v754_v2 = vmul.f32 0.0078125, %v747_v1 }
 0x23b   : > { %v763_v3 = vpop.xlane.xlu1 %762 }
 0x23c   : > { %v774_v4 = vmul.f32 %v754_v2, %v754_v2  ;;  %v770_v5 = vmul.f32 0.0078125, %v763_v3  ;;  %v782_v43 = vsub.f32 %v1748_v33, %v754_v2 }
 0x23e   : > { %v778_v7 = vsub.f32 %v770_v5, %v774_v4 }
 0x240   : > { %v786_v25 = vadd.f32 1e-05, %v778_v7 }
 0x241   : > { %v749_v8 = vpop.xlane.xlu0 %748 }
 0x242   : > { %1444 = vrsqrt.f32 %v786_v25  ;;  %v755_v9 = vmul.f32 0.0078125, %v749_v8  ;;  %vm796_vm14 = vweird.f32 %v786_v25 }
 0x243   : > { %v765_v10 = vpop.xlane.xlu2 %764 }
 0x244   : > { %v775_v11 = vmul.f32 %v755_v9, %v755_v9  ;;  %v771_v13 = vmul.f32 0.0078125, %v765_v10  ;;  %v783_v44 = vsub.f32 %v1753_v40, %v755_v9 }
 0x246   : > { %v779_v14 = vsub.f32 %v771_v13, %v775_v11 }
 0x248   : > { %v1445_v26 = vpop.eup %1444  ;;  %v787_v12 = vadd.f32 1e-05, %v779_v14 }
 0x249   : > { %v791_v35 = vmul.f32 %v1445_v26, %v786_v25  ;;  %v751_v15 = vpop.xlane.xlu0 %750  ;;  %vm797_vm13 = vweird.f32 %v1445_v26 }
 0x24a   : > { %1446 = vrsqrt.f32 %v787_v12  ;;  %v756_v36 = vmul.f32 0.0078125, %v751_v15  ;;  %vm798_vm0 = vmor %vm796_vm14, %vm797_vm13  ;;  %vm806_vm1 = vweird.f32 %v787_v12 }
 0x24b   : > { %v792_v16 = vmul.f32 %v1445_v26, %v791_v35  ;;  %v767_v17 = vpop.xlane.xlu2 %766 }
 0x24c   : > { %v776_v18 = vmul.f32 %v756_v36, %v756_v36  ;;  %v772_v19 = vmul.f32 0.0078125, %v767_v17  ;;  %v784_v0 = vsub.f32 %v1758_v48, %v756_v36  ;;  %v1388_v17 = vld [vmem:[#allocation4 + $0x38] sm:$0xff] }
 0x24d   : > { %v793_v20 = vmul.f32 0.5, %v792_v16  ;;  %1085 = vmatpush.bf16.msrb.mxu1 %v1388_v17 }
 0x24e   : > { %v780_v21 = vsub.f32 %v772_v19, %v776_v18  ;;  %v1387_v18 = vld [vmem:[#allocation4 + $0x30] sm:$0xff]  ;;  %v1386_v19 = vld [vmem:[#allocation4 + $0x28] sm:$0xff] }
 0x24f   : > { %v794_v24 = vsub.f32 1.5, %v793_v20  ;;  %v1385_v20 = vld [vmem:[#allocation4 + $0x20] sm:$0xff] }
 0x250   : > { %v1447_v22 = vpop.eup %1446  ;;  %v788_v23 = vadd.f32 1e-05, %v780_v21  ;;  %v1384_v21 = vld [vmem:[#allocation4 + $0x18] sm:$0xff] }
 0x251   : > { %v801_v27 = vmul.f32 %v1447_v22, %v787_v12  ;;  %v753_v28 = vpop.xlane.xlu1 %752  ;;  %v795_v55 = vmul.f32 %v1445_v26, %v794_v24  ;;  %vm807_vm15 = vweird.f32 %v1447_v22  ;;  %1086 = vmatpush.bf16.msrb.mxu1 %v1387_v18 }
 0x252   : > { %1448 = vrsqrt.f32 %v788_v23  ;;  %v757_v29 = vmul.f32 0.0078125, %v753_v28  ;;  %vm808_vm2 = vmor %vm806_vm1, %vm807_vm15  ;;  %vm816_vm4 = vweird.f32 %v788_v23 }
 0x253   : > { %v802_v30 = vmul.f32 %v1447_v22, %v801_v27  ;;  %v769_v45 = vpop.xlane.xlu0 %768  ;;  %v799_v41 = vsel %vm798_vm0, %v1445_v26, %v795_v55 }
 0x254   : > { %v777_v31 = vmul.f32 %v757_v29, %v757_v29  ;;  %v773_v46 = vmul.f32 0.0078125, %v769_v45  ;;  %v830_v50 = vmul.f32 %v799_v41, %v782_v43  ;;  %v785_v1 = vsub.f32 %v1763_v54, %v757_v29  ;;  %v1381_v45 = vld [vmem:[#allocation4] sm:$0xff] }
 0x255   : > { %v803_v32 = vmul.f32 0.5, %v802_v30  ;;  %1087 = vmatpush.bf16.msrb.mxu1 %v1386_v19 }
 0x256   : > { %v781_v56 = vsub.f32 %v773_v46, %v777_v31 }
 0x257   : > { %v804_v34 = vsub.f32 1.5, %v803_v32 }
 0x258   : > { %v1449_v37 = vpop.eup %1448  ;;  %v789_v38 = vadd.f32 1e-05, %v781_v56 }
 0x259   : > { %v811_v39 = vmul.f32 %v1449_v37, %v788_v23  ;;  %v805_v42 = vmul.f32 %v1447_v22, %v804_v34  ;;  %vm817_vm3 = vweird.f32 %v1449_v37  ;;  %1088 = vmatpush.bf16.msrb.mxu1 %v1385_v20  ;;  %v1382_v23 = vld [vmem:[#allocation4 + $0x8] sm:$0xff] }
 0x25a   : > { %1450 = vrsqrt.f32 %v789_v38  ;;  %vm818_vm6 = vmor %vm816_vm4, %vm817_vm3  ;;  %vm826_vm7 = vweird.f32 %v789_v38 }
 0x25b   : > { %v812_v47 = vmul.f32 %v1449_v37, %v811_v39  ;;  %v809_v49 = vsel %vm808_vm2, %v1447_v22, %v805_v42  ;;  %v1383_v22 = vld [vmem:[#allocation4 + $0x10] sm:$0xff] }
 0x25c   : > { %v831_v51 = vmul.f32 %v809_v49, %v783_v44 }
 0x25d   : > { %v813_v52 = vmul.f32 0.5, %v812_v47  ;;  %1089 = vmatpush.bf16.msrb.mxu1 %v1384_v21 }
 0x25e   : > { %v850_v53 = vpack.c.bf16 %v831_v51, %v830_v50 }
 0x25f   : > { %v814_v58 = vsub.f32 1.5, %v813_v52 }
 0x260   : > { %v1451_v57 = vpop.eup %1450  ;;  %912 = vmatmul.bf16.vlgmr.msrb.gmra.mxu0 %v850_v53 }
 0x261   : > { %v821_v59 = vmul.f32 %v1451_v57, %v789_v38  ;;  %v815_v62 = vmul.f32 %v1449_v37, %v814_v58  ;;  %vm827_vm5 = vweird.f32 %v1451_v57  ;;  %1090 = vmatpush.bf16.msrb.mxu1 %v1383_v22 }
 0x262   : > { %vm828_vm8 = vmor %vm826_vm7, %vm827_vm5 }
 0x263   : > { %v822_v60 = vmul.f32 %v1451_v57, %v821_v59  ;;  %v819_v40 = vsel %vm818_vm6, %v1449_v37, %v815_v62 }
 0x264   : > { %v832_v3 = vmul.f32 %v819_v40, %v784_v0 }
 0x265   : > { %v823_v61 = vmul.f32 0.5, %v822_v60  ;;  %1091 = vmatpush.bf16.msrb.mxu1 %v1382_v23 }
 0x267   : > { %v824_v33 = vsub.f32 1.5, %v823_v61 }
 0x269   : > { %v825_v63 = vmul.f32 %v1451_v57, %v824_v33  ;;  %1092 = vmatpush.bf16.msrb.mxu1 %v1381_v45 }
 0x26b   : > { %v829_v2 = vsel %vm828_vm8, %v1451_v57, %v825_v63 }
 0x26c   : > { %v833_v4 = vmul.f32 %v829_v2, %v785_v1 }
 0x26e   : > { %v851_v5 = vpack.c.bf16 %v833_v4, %v832_v3 }
 0x270   : > { %917 = vmatmul.bf16.gmra.mxu0 %v851_v5 }
 0x2dd   : > { %v913_v7 = vpop.f32.mrf.mxu0 }
 0x2de   : > { %v914_v25 = vadd.f32 %v1434_v6, %v913_v7 }
 0x2e0   : > { %v1799_v8 = vmax.f32 %v914_v25, 0.0 }
 0x2e2   : > { %927 = vadd.xlane.f32.xlu1 %v1799_v8  ;;  %v939_v48 = vmul.f32 %v1799_v8, %v1799_v8 }
 0x2e4   : > { %943 = vadd.xlane.f32.xlu0 %v939_v48 }
 0x2e5   : > { %v915_v54 = vpop.f32.mrf.mxu0 }
 0x2e6   : > { %v916_v9 = vadd.f32 %v1434_v6, %v915_v54 }
 0x2e8   : > { %v1804_v10 = vmax.f32 %v916_v9, 0.0 }
 0x2ea   : > { %929 = vadd.xlane.f32.xlu2 %v1804_v10  ;;  %v940_v11 = vmul.f32 %v1804_v10, %v1804_v10 }
 0x2ec   : > { %945 = vadd.xlane.f32.xlu1 %v940_v11 }
 0x2ed   : > { %v918_v13 = vpop.f32.mrf.mxu0 }
 0x2ee   : > { %v919_v14 = vadd.f32 %v1434_v6, %v918_v13 }
 0x2f0   : > { %v1809_v26 = vmax.f32 %v919_v14, 0.0 }
 0x2f2   : > { %931 = vadd.xlane.f32.xlu2 %v1809_v26  ;;  %v941_v12 = vmul.f32 %v1809_v26, %v1809_v26 }
 0x2f4   : > { %947 = vadd.xlane.f32.xlu1 %v941_v12 }
 0x2f5   : > { %v920_v35 = vpop.f32.mrf.mxu0 }
 0x2f6   : > { %v921_v15 = vadd.f32 %v1434_v6, %v920_v35 }
 0x2f8   : > { %v1814_v36 = vmax.f32 %v921_v15, 0.0 }
 0x2fa   : > { %933 = vadd.xlane.f32.xlu0 %v1814_v36  ;;  %v942_v16 = vmul.f32 %v1814_v36, %v1814_v36 }
 0x2fc   : > { %949 = vadd.xlane.f32.xlu2 %v942_v16 }
 0x355   : > { %v928_v24 = vpop.xlane.xlu1 %927 }
 0x356   : > { %v935_v27 = vmul.f32 0.015625, %v928_v24 }
 0x357   : > { %v944_v28 = vpop.xlane.xlu0 %943 }
 0x358   : > { %v955_v29 = vmul.f32 %v935_v27, %v935_v27  ;;  %v951_v30 = vmul.f32 0.015625, %v944_v28  ;;  %v963_v54 = vsub.f32 %v1799_v8, %v935_v27 }
 0x35a   : > { %v959_v31 = vsub.f32 %v951_v30, %v955_v29 }
 0x35c   : > { %v967_v46 = vadd.f32 1e-05, %v959_v31  ;;  %v1435_v31 = vld [vmem:[%s1841_s8] ss:$0 sm:$0xff] }
 0x35d   : > { %v930_v32 = vpop.xlane.xlu2 %929 }
 0x35e   : > { %1452 = vrsqrt.f32 %v967_v46  ;;  %v936_v55 = vmul.f32 0.015625, %v930_v32  ;;  %vm977_vm10 = vweird.f32 %v967_v46 }
 0x35f   : > { %v946_v56 = vpop.xlane.xlu1 %945 }
 0x360   : > { %v956_v34 = vmul.f32 %v936_v55, %v936_v55  ;;  %v952_v37 = vmul.f32 0.015625, %v946_v56  ;;  %v964_v9 = vsub.f32 %v1804_v10, %v936_v55 }
 0x362   : > { %v960_v38 = vsub.f32 %v952_v37, %v956_v34 }
 0x364   : > { %v1453_v39 = vpop.eup %1452  ;;  %v968_v41 = vadd.f32 1e-05, %v960_v38 }
 0x365   : > { %v972_v42 = vmul.f32 %v1453_v39, %v967_v46  ;;  %v932_v43 = vpop.xlane.xlu2 %931  ;;  %vm978_vm9 = vweird.f32 %v1453_v39 }
 0x366   : > { %1454 = vrsqrt.f32 %v968_v41  ;;  %v937_v44 = vmul.f32 0.015625, %v932_v43  ;;  %vm979_vm12 = vmor %vm977_vm10, %vm978_vm9  ;;  %vm987_vm13 = vweird.f32 %v968_v41 }
 0x367   : > { %v973_v47 = vmul.f32 %v1453_v39, %v972_v42  ;;  %v948_v49 = vpop.xlane.xlu1 %947 }
 0x368   : > { %v957_v50 = vmul.f32 %v937_v44, %v937_v44  ;;  %v953_v51 = vmul.f32 0.015625, %v948_v49  ;;  %v965_v23 = vsub.f32 %v1809_v26, %v937_v44 }
 0x369   : > { %v974_v52 = vmul.f32 0.5, %v973_v47 }
 0x36a   : > { %v961_v53 = vsub.f32 %v953_v51, %v957_v50 }
 0x36b   : > { %v975_v59 = vsub.f32 1.5, %v974_v52 }
 0x36c   : > { %v1455_v57 = vpop.eup %1454  ;;  %v969_v58 = vadd.f32 1e-05, %v961_v53 }
 0x36d   : > { %v982_v60 = vmul.f32 %v1455_v57, %v968_v41  ;;  %v934_v61 = vpop.xlane.xlu0 %933  ;;  %v976_v2 = vmul.f32 %v1453_v39, %v975_v59  ;;  %vm988_vm11 = vweird.f32 %v1455_v57 }
 0x36e   : > { %1456 = vrsqrt.f32 %v969_v58  ;;  %v938_v62 = vmul.f32 0.015625, %v934_v61  ;;  %vm989_vm14 = vmor %vm987_vm13, %vm988_vm11  ;;  %vm997_vm0 = vweird.f32 %v969_v58 }
 0x36f   : > { %v983_v33 = vmul.f32 %v1455_v57, %v982_v60  ;;  %v950_v40 = vpop.xlane.xlu2 %949  ;;  %v980_v25 = vsel %vm979_vm12, %v1453_v39, %v976_v2 }
 0x370   : > { %v958_v63 = vmul.f32 %v938_v62, %v938_v62  ;;  %v954_v0 = vmul.f32 0.015625, %v950_v40  ;;  %v1011_v14 = vmul.f32 %v980_v25, %v963_v54  ;;  %v966_v24 = vsub.f32 %v1814_v36, %v938_v62 }
 0x371   : > { %v984_v1 = vmul.f32 0.5, %v983_v33 }
 0x372   : > { %v962_v3 = vsub.f32 %v954_v0, %v958_v63 }
 0x373   : > { %v985_v4 = vsub.f32 1.5, %v984_v1 }
 0x374   : > { %v1457_v5 = vpop.eup %1456  ;;  %v970_v6 = vadd.f32 1e-05, %v962_v3 }
 0x375   : > { %v992_v7 = vmul.f32 %v1457_v5, %v969_v58  ;;  %v986_v48 = vmul.f32 %v1455_v57, %v985_v4  ;;  %vm998_vm15 = vweird.f32 %v1457_v5 }
 0x376   : > { %1458 = vrsqrt.f32 %v970_v6  ;;  %vm999_vm2 = vmor %vm997_vm0, %vm998_vm15  ;;  %vm1007_vm3 = vweird.f32 %v970_v6 }
 0x377   : > { %v993_v11 = vmul.f32 %v1457_v5, %v992_v7  ;;  %v990_v13 = vsel %vm989_vm14, %v1455_v57, %v986_v48 }
 0x378   : > { %v1012_v12 = vmul.f32 %v990_v13, %v964_v9 }
 0x379   : > { %v994_v35 = vmul.f32 0.5, %v993_v11 }
 0x37a   : > { %v1015_v15 = vpack.c.bf16 %v1012_v12, %v1011_v14 }
 0x37b   : > { %v995_v17 = vsub.f32 1.5, %v994_v35 }
 0x37c   : > { %v1459_v16 = vpop.eup %1458  ;;  %1093 = vmatmul.bf16.vlgmr.msrb.gmra.mxu1 %v1015_v15 }
 0x37d   : > { %v1002_v18 = vmul.f32 %v1459_v16, %v970_v6  ;;  %v996_v21 = vmul.f32 %v1457_v5, %v995_v17  ;;  %vm1008_vm1 = vweird.f32 %v1459_v16 }
 0x37e   : > { %vm1009_vm4 = vmor %vm1007_vm3, %vm1008_vm1 }
 0x37f   : > { %v1003_v19 = vmul.f32 %v1459_v16, %v1002_v18  ;;  %v1000_v10 = vsel %vm999_vm2, %v1457_v5, %v996_v21 }
 0x380   : > { %v1013_v28 = vmul.f32 %v1000_v10, %v965_v23 }
 0x381   : > { %v1004_v20 = vmul.f32 0.5, %v1003_v19 }
 0x383   : > { %v1005_v8 = vsub.f32 1.5, %v1004_v20 }
 0x385   : > { %v1006_v22 = vmul.f32 %v1459_v16, %v1005_v8 }
 0x387   : > { %v1010_v27 = vsel %vm1009_vm4, %v1459_v16, %v1006_v22 }
 0x388   : > { %v1014_v29 = vmul.f32 %v1010_v27, %v966_v24 }
 0x38a   : > { %v1016_v30 = vpack.c.bf16 %v1014_v29, %v1013_v28 }
 0x38c   : > { %1098 = vmatmul.bf16.gmra.mxu1 %v1016_v30 }
 0x3f9   : > { %v1094_v45 = vpop.f32.mrf.mxu1 }
 0x3fa   : > { %v1095_v32 = vadd.f32 %v1435_v31, %v1094_v45 }
 0x401   : > { %v1096_v46 = vpop.f32.mrf.mxu1 }
 0x402   : > { %v1097_v55 = vadd.f32 %v1435_v31, %v1096_v46 }
 0x404   : > { %v1392_v26 = vpack.c.bf16 %v1097_v55, %v1095_v32 }
 0x406   : > { %1393 = vst [vmem:[%s368_s14] sm:$0xff] %v1392_v26  }
 0x409   : > { %v1099_v36 = vpop.f32.mrf.mxu1 }
 0x40a   : > { %v1100_v34 = vadd.f32 %v1435_v31, %v1099_v36 }
 0x411   : > { %v1101_v56 = vpop.f32.mrf.mxu1 }
 0x412   : > { %v1102_v37 = vadd.f32 %v1435_v31, %v1101_v56 }
 0x414   : > { %v1397_v38 = vpack.c.bf16 %v1102_v37, %v1100_v34 }
 0x416   : > { %1399 = vst [vmem:[%s368_s14 + $0x8] sm:$0xff] %v1397_v38  }
 0x417 PF: > { %s21_s30 = sadd.s32 1, %s1534_s30  }
 0x418   : > { %p18_p7 = scmp.ge.s32.totalorder %s21_s30, 4  }
 0x41a   :  { %20 = sbr.rel (!%p18_p7) target bundleno = 2 (0x2), region = 95 }
 0x41f   :  { %1134 = vsyncpa [#allocation3], 1 }
 0x420   :  { %1136 = vsyncpa [#allocation3 + $0x1], 1 }
 0x421   :  { %1137 = vsyncpa [#allocation5], 1 }

</bundles_post_ra>
